<compile_context>
chip_gen: v7x
topology: tpu7x:2x2x1
jax: 0.10.0
libtpu: 0.0.40
codegen_flags: <defaults>
</compile_context>

<pallas_src>
import functools

import jax
import jax.numpy as jnp
from jax import lax
from jax.experimental import pallas as pl
from jax.experimental.pallas import tpu as pltpu


# ----------------------------------------------------------------------------
# Fused kernel: for one batch, all heads.
#   x:      (1, T, E)      hidden states
#   wq/wk/wv: (H, E, D)    pre-transposed per-head projection weights (q pre-scaled)
#   bq/bk/bv: (H, 1, D)    per-head biases (q bias pre-scaled)
#   wo:     (H, D, E)      pre-transposed per-head slices of out_proj weight
#   bo:     (1, E)         out_proj bias
#   mask:   (1, 1, T, S)   optional additive attention mask
# outputs:
#   o:      (1, T, E)      attention output (lane-dense)
#   w:      (1, H, T, S)   optional softmax attention weights
# ----------------------------------------------------------------------------
def _fused_attention_kernel(*refs, num_heads, has_mask, want_weights):
    if has_mask:
        (x_ref, wq_ref, wk_ref, wv_ref, bq_ref, bk_ref, bv_ref,
         wo_ref, bo_ref, mask_ref) = refs[:10]
        out_refs = refs[10:]
    else:
        (x_ref, wq_ref, wk_ref, wv_ref, bq_ref, bk_ref, bv_ref,
         wo_ref, bo_ref) = refs[:9]
        mask_ref = None
        out_refs = refs[9:]
    o_ref = out_refs[0]
    w_ref = out_refs[1] if want_weights else None

    x = x_ref[0]                      # (T, E) in the module dtype (bf16/f32)
    cdt = x.dtype
    T, E = x.shape
    H = num_heads

    if has_mask:
        m = mask_ref[0, 0].astype(jnp.float32)     # (T, S)

    acc = jnp.zeros((T, E), dtype=jnp.float32)     # out-projection accumulator (lane-dense)

    # Static unroll over heads; all per-head intermediates stay in VMEM/vregs.
    for h in range(H):
        # Per-head projections; weights already transposed so MXU consumes them natively.
        q = (jnp.dot(x, wq_ref[h], preferred_element_type=jnp.float32)
             + bq_ref[h].astype(jnp.float32)).astype(cdt)           # (T, D), already scaled
        k = (jnp.dot(x, wk_ref[h], preferred_element_type=jnp.float32)
             + bk_ref[h].astype(jnp.float32)).astype(cdt)           # (S, D)
        v = (jnp.dot(x, wv_ref[h], preferred_element_type=jnp.float32)
             + bv_ref[h].astype(jnp.float32)).astype(cdt)           # (S, D)

        # scores = q @ k^T without materializing a transpose: contract head_dim of both.
        s = lax.dot_general(q, k, (((1,), (1,)), ((), ())),
                            preferred_element_type=jnp.float32)      # (T, S) f32
        if has_mask:
            s = s + m

        # numerically-stable softmax in f32; reciprocal on the EUP (approx) slot.
        s = s - jnp.max(s, axis=-1, keepdims=True)
        e = jnp.exp(s)
        p = e * pl.reciprocal(jnp.sum(e, axis=-1, keepdims=True), approx=True)

        if want_weights:
            w_ref[0, h] = p.astype(w_ref.dtype)

        ctx = jnp.dot(p.astype(cdt), v,
                      preferred_element_type=jnp.float32).astype(cdt)   # (T, D)
        # out-projection contribution of this head, accumulated into the (T, E) slab.
        acc = acc + jnp.dot(ctx, wo_ref[h], preferred_element_type=jnp.float32)

    o_ref[0] = (acc + bo_ref[...].astype(jnp.float32)).astype(o_ref.dtype)


# ----------------------------------------------------------------------------
# Wrapper: weight re-arrangement (one-time, tiny) + pallas_call.
# ----------------------------------------------------------------------------
def biogpt_attention_forward(params, hidden_states, attention_mask=None,
                             num_heads=4, output_attentions=True):
    B, T, E = hidden_states.shape
    H = num_heads
    assert E % H == 0
    D = E // H
    scaling = D ** -0.5
    dt = hidden_states.dtype

    # torch.nn.Linear weights are (out_features, in_features); transpose once here and
    # fold the q scaling into both the q weight and q bias (matches q_proj(x)*scaling).
    wq = (params["q_w"].T * scaling).reshape(E, H, D).transpose(1, 0, 2).astype(dt)  # (H, E, D)
    wk = params["k_w"].T.reshape(E, H, D).transpose(1, 0, 2).astype(dt)              # (H, E, D)
    wv = params["v_w"].T.reshape(E, H, D).transpose(1, 0, 2).astype(dt)              # (H, E, D)
    wo = params["o_w"].T.reshape(H, D, E).astype(dt)                                 # (H, D, E)
    bq = (params["q_b"][0] * scaling).reshape(H, 1, D).astype(dt)                    # (H, 1, D)
    bk = params["k_b"][0].reshape(H, 1, D).astype(dt)
    bv = params["v_b"][0].reshape(H, 1, D).astype(dt)
    bo = params["o_b"].astype(dt)                                                    # (1, E)

    has_mask = attention_mask is not None

    in_specs = [
        pl.BlockSpec((1, T, E), lambda b: (b, 0, 0)),     # hidden states for this batch
        pl.BlockSpec((H, E, D), lambda b: (0, 0, 0)),     # wq (constant index -> resident)
        pl.BlockSpec((H, E, D), lambda b: (0, 0, 0)),     # wk
        pl.BlockSpec((H, E, D), lambda b: (0, 0, 0)),     # wv
        pl.BlockSpec((H, 1, D), lambda b: (0, 0, 0)),     # bq
        pl.BlockSpec((H, 1, D), lambda b: (0, 0, 0)),     # bk
        pl.BlockSpec((H, 1, D), lambda b: (0, 0, 0)),     # bv
        pl.BlockSpec((H, D, E), lambda b: (0, 0, 0)),     # wo
        pl.BlockSpec((1, E), lambda b: (0, 0)),           # bo
    ]
    inputs = [hidden_states, wq, wk, wv, bq, bk, bv, wo, bo]
    if has_mask:
        in_specs.append(pl.BlockSpec((1, 1, T, T), lambda b: (b, 0, 0, 0)))
        inputs.append(attention_mask.astype(dt))

    out_shapes = [jax.ShapeDtypeStruct((B, T, E), dt)]
    out_specs = [pl.BlockSpec((1, T, E), lambda b: (b, 0, 0))]
    if output_attentions:
        out_shapes.append(jax.ShapeDtypeStruct((B, H, T, T), dt))
        out_specs.append(pl.BlockSpec((1, H, T, T), lambda b: (b, 0, 0, 0)))

    kernel = functools.partial(_fused_attention_kernel, num_heads=H,
                               has_mask=has_mask, want_weights=output_attentions)

    results = pl.pallas_call(
        kernel,
        out_shape=out_shapes,
        grid=(B,),
        in_specs=in_specs,
        out_specs=out_specs,
        compiler_params=pltpu.CompilerParams(
            dimension_semantics=("parallel",)),
    )(*inputs)

    if output_attentions:
        attn_out, attn_weights = results
    else:
        attn_out = results[0]
        attn_weights = None
    return attn_out, attn_weights


# ----------------------------------------------------------------------------
# Pure-JAX reference for validation (mirrors the PyTorch module).
# ----------------------------------------------------------------------------
def reference_forward(params, hidden_states, attention_mask, num_heads):
    bsz, tgt_len, embed_dim = hidden_states.shape
    head_dim = embed_dim // num_heads
    scaling = head_dim ** -0.5

    q = (hidden_states @ params["q_w"].T + params["q_b"][0]) * scaling
    k = hidden_states @ params["k_w"].T + params["k_b"][0]
    v = hidden_states @ params["v_w"].T + params["v_b"][0]

    def sh(t):
        return t.reshape(bsz, tgt_len, num_heads, head_dim).transpose(0, 2, 1, 3)

    qh, kh, vh = sh(q), sh(k), sh(v)
    scores = jnp.einsum("bhtd,bhsd->bhts", qh, kh)
    if attention_mask is not None:
        scores = scores + attention_mask
    probs = jax.nn.softmax(scores, axis=-1)
    ctx = jnp.einsum("bhts,bhsd->bhtd", probs, vh)
    ctx = ctx.transpose(0, 2, 1, 3).reshape(bsz, tgt_len, embed_dim)
    out = ctx @ params["o_w"].T + params["o_b"][0]
    return out, probs


if __name__ == "__main__":
    # Small configuration consistent with the module.
    batch, seq, embed_dim, num_heads = 2, 8, 32, 4

    key = jax.random.PRNGKey(0)
    ks = jax.random.split(key, 10)
    init = lambda k, shape: (jax.random.normal(k, shape, dtype=jnp.float32) * 0.05)

    params = {
        "q_w": init(ks[0], (embed_dim, embed_dim)),
        "q_b": init(ks[1], (1, embed_dim)),
        "k_w": init(ks[2], (embed_dim, embed_dim)),
        "k_b": init(ks[3], (1, embed_dim)),
        "v_w": init(ks[4], (embed_dim, embed_dim)),
        "v_b": init(ks[5], (1, embed_dim)),
        "o_w": init(ks[6], (embed_dim, embed_dim)),
        "o_b": init(ks[7], (1, embed_dim)),
    }

    hidden_states = jax.random.normal(ks[8], (batch, seq, embed_dim), dtype=jnp.float32)

    # Causal additive mask in BioGPT's (bsz, 1, tgt, src) convention.
    causal = jnp.tril(jnp.ones((seq, seq), dtype=jnp.float32))
    attention_mask = jnp.where(causal[None, None, :, :] == 1, 0.0, -1e9).astype(jnp.float32)
    attention_mask = jnp.broadcast_to(attention_mask, (batch, 1, seq, seq))

    # --- variant 1: explicit mask, output_attentions=True ---
    out, attn_w = biogpt_attention_forward(params, hidden_states, attention_mask,
                                           num_heads=num_heads, output_attentions=True)
    out = jax.block_until_ready(out)
    attn_w = jax.block_until_ready(attn_w)

    ref_out, ref_w = reference_forward(params, hidden_states, attention_mask, num_heads)
    assert out.shape == (batch, seq, embed_dim)
    assert attn_w.shape == (batch, num_heads, seq, seq)
    assert jnp.allclose(out, ref_out, atol=2e-3, rtol=2e-3)
    assert jnp.allclose(attn_w, ref_w, atol=2e-3, rtol=2e-3)

    # --- variant 2: no mask, output_attentions=False (no weights written back) ---
    out2, attn_w2 = biogpt_attention_forward(params, hidden_states, None,
                                             num_heads=num_heads, output_attentions=False)
    out2 = jax.block_until_ready(out2)
    ref_out2, _ = reference_forward(params, hidden_states, None, num_heads)
    assert attn_w2 is None
    assert jnp.allclose(out2, ref_out2, atol=2e-3, rtol=2e-3)

    print("KERNEL_OK")
</pallas_src>

<mosaic_0001>
module attributes {stable_mosaic.version = 11 : i64} {
  func.func @_fused_attention_kernel(%arg0: i32, %arg1: memref<1x8x32xf32, #tpu.memory_space<vmem>>, %arg2: memref<4x32x8xf32, #tpu.memory_space<vmem>>, %arg3: memref<4x32x8xf32, #tpu.memory_space<vmem>>, %arg4: memref<4x32x8xf32, #tpu.memory_space<vmem>>, %arg5: memref<4x1x8xf32, #tpu.memory_space<vmem>>, %arg6: memref<4x1x8xf32, #tpu.memory_space<vmem>>, %arg7: memref<4x1x8xf32, #tpu.memory_space<vmem>>, %arg8: memref<4x8x32xf32, #tpu.memory_space<vmem>>, %arg9: memref<1x32xf32, #tpu.memory_space<vmem>>, %arg10: memref<1x1x8x8xf32, #tpu.memory_space<vmem>>, %arg11: memref<1x8x32xf32, #tpu.memory_space<vmem>>, %arg12: memref<1x4x8x8xf32, #tpu.memory_space<vmem>>) attributes {dimension_semantics = [#tpu.dimension_semantics<parallel>], iteration_bounds = array<i64: 2>, scalar_prefetch = 0 : i64, scratch_operands = 0 : i64, tpu.core_type = #tpu.core_type<tc>, window_params = [{transform_indices = @transform_0, window_bounds = array<i64: 1, 8, 32>}, {pipeline_mode = #tpu.pipeline_mode<synchronous>, transform_indices = @transform_1, window_bounds = array<i64: 4, 32, 8>}, {pipeline_mode = #tpu.pipeline_mode<synchronous>, transform_indices = @transform_2, window_bounds = array<i64: 4, 32, 8>}, {pipeline_mode = #tpu.pipeline_mode<synchronous>, transform_indices = @transform_3, window_bounds = array<i64: 4, 32, 8>}, {pipeline_mode = #tpu.pipeline_mode<synchronous>, transform_indices = @transform_4, window_bounds = array<i64: 4, 1, 8>}, {pipeline_mode = #tpu.pipeline_mode<synchronous>, transform_indices = @transform_5, window_bounds = array<i64: 4, 1, 8>}, {pipeline_mode = #tpu.pipeline_mode<synchronous>, transform_indices = @transform_6, window_bounds = array<i64: 4, 1, 8>}, {pipeline_mode = #tpu.pipeline_mode<synchronous>, transform_indices = @transform_7, window_bounds = array<i64: 4, 8, 32>}, {pipeline_mode = #tpu.pipeline_mode<synchronous>, transform_indices = @transform_8, window_bounds = array<i64: 1, 32>}, {transform_indices = @transform_9, window_bounds = array<i64: 1, 1, 8, 8>}, {transform_indices = @transform_10, window_bounds = array<i64: 1, 8, 32>}, {transform_indices = @transform_11, window_bounds = array<i64: 1, 4, 8, 8>}]} {
    %c0 = arith.constant 0 : index
    %c0_0 = arith.constant 0 : index
    %c0_1 = arith.constant 0 : index
    %0 = vector.load %arg1[%c0, %c0_0, %c0_1] : memref<1x8x32xf32, #tpu.memory_space<vmem>>, vector<1x8x32xf32>
    %1 = vector.shape_cast %0 : vector<1x8x32xf32> to vector<8x32xf32>
    %c0_2 = arith.constant 0 : index
    %c0_3 = arith.constant 0 : index
    %c0_4 = arith.constant 0 : index
    %c0_5 = arith.constant 0 : index
    %2 = vector.load %arg10[%c0_2, %c0_3, %c0_4, %c0_5] : memref<1x1x8x8xf32, #tpu.memory_space<vmem>>, vector<1x1x8x8xf32>
    %3 = vector.shape_cast %2 : vector<1x1x8x8xf32> to vector<8x8xf32>
    %cst = arith.constant 0.000000e+00 : f32
    %4 = vector.broadcast %cst : f32 to vector<8x32xf32>
    %c0_6 = arith.constant 0 : index
    %c0_7 = arith.constant 0 : index
    %c0_8 = arith.constant 0 : index
    %5 = vector.load %arg2[%c0_6, %c0_7, %c0_8] : memref<4x32x8xf32, #tpu.memory_space<vmem>>, vector<1x32x8xf32>
    %6 = vector.shape_cast %5 : vector<1x32x8xf32> to vector<32x8xf32>
    %cst_9 = arith.constant dense<0.000000e+00> : vector<8x8xf32>
    %7 = tpu.matmul %1, %6, %cst_9 {dimension_numbers = #tpu.dot_dimension_numbers<[1], [0], [0], [1], [0, 0, 1, 1], [], []>} : vector<8x32xf32>, vector<32x8xf32>, vector<8x8xf32> -> vector<8x8xf32>
    %c0_10 = arith.constant 0 : index
    %c0_11 = arith.constant 0 : index
    %c0_12 = arith.constant 0 : index
    %8 = vector.load %arg5[%c0_10, %c0_11, %c0_12] : memref<4x1x8xf32, #tpu.memory_space<vmem>>, vector<1x1x8xf32>
    %9 = vector.shape_cast %8 : vector<1x1x8xf32> to vector<1x8xf32>
    %10 = vector.broadcast %9 : vector<1x8xf32> to vector<8x8xf32>
    %11 = arith.addf %7, %10 : vector<8x8xf32>
    %c0_13 = arith.constant 0 : index
    %c0_14 = arith.constant 0 : index
    %c0_15 = arith.constant 0 : index
    %12 = vector.load %arg3[%c0_13, %c0_14, %c0_15] : memref<4x32x8xf32, #tpu.memory_space<vmem>>, vector<1x32x8xf32>
    %13 = vector.shape_cast %12 : vector<1x32x8xf32> to vector<32x8xf32>
    %cst_16 = arith.constant dense<0.000000e+00> : vector<8x8xf32>
    %14 = tpu.matmul %1, %13, %cst_16 {dimension_numbers = #tpu.dot_dimension_numbers<[1], [0], [0], [1], [0, 0, 1, 1], [], []>} : vector<8x32xf32>, vector<32x8xf32>, vector<8x8xf32> -> vector<8x8xf32>
    %c0_17 = arith.constant 0 : index
    %c0_18 = arith.constant 0 : index
    %c0_19 = arith.constant 0 : index
    %15 = vector.load %arg6[%c0_17, %c0_18, %c0_19] : memref<4x1x8xf32, #tpu.memory_space<vmem>>, vector<1x1x8xf32>
    %16 = vector.shape_cast %15 : vector<1x1x8xf32> to vector<1x8xf32>
    %17 = vector.broadcast %16 : vector<1x8xf32> to vector<8x8xf32>
    %18 = arith.addf %14, %17 : vector<8x8xf32>
    %c0_20 = arith.constant 0 : index
    %c0_21 = arith.constant 0 : index
    %c0_22 = arith.constant 0 : index
    %19 = vector.load %arg4[%c0_20, %c0_21, %c0_22] : memref<4x32x8xf32, #tpu.memory_space<vmem>>, vector<1x32x8xf32>
    %20 = vector.shape_cast %19 : vector<1x32x8xf32> to vector<32x8xf32>
    %cst_23 = arith.constant dense<0.000000e+00> : vector<8x8xf32>
    %21 = tpu.matmul %1, %20, %cst_23 {dimension_numbers = #tpu.dot_dimension_numbers<[1], [0], [0], [1], [0, 0, 1, 1], [], []>} : vector<8x32xf32>, vector<32x8xf32>, vector<8x8xf32> -> vector<8x8xf32>
    %c0_24 = arith.constant 0 : index
    %c0_25 = arith.constant 0 : index
    %c0_26 = arith.constant 0 : index
    %22 = vector.load %arg7[%c0_24, %c0_25, %c0_26] : memref<4x1x8xf32, #tpu.memory_space<vmem>>, vector<1x1x8xf32>
    %23 = vector.shape_cast %22 : vector<1x1x8xf32> to vector<1x8xf32>
    %24 = vector.broadcast %23 : vector<1x8xf32> to vector<8x8xf32>
    %25 = arith.addf %21, %24 : vector<8x8xf32>
    %cst_27 = arith.constant dense<0.000000e+00> : vector<8x8xf32>
    %26 = tpu.matmul %11, %18, %cst_27 {dimension_numbers = #tpu.dot_dimension_numbers<[1], [1], [0], [0], [0, 0, 1, 0], [], []>} : vector<8x8xf32>, vector<8x8xf32>, vector<8x8xf32> -> vector<8x8xf32>
    %27 = arith.addf %26, %3 : vector<8x8xf32>
    %cst_28 = arith.constant dense<0xFF800000> : vector<8xf32>
    %28 = vector.multi_reduction <maximumf>, %27, %cst_28 [1] : vector<8x8xf32> to vector<8xf32>
    %29 = vector.shape_cast %28 : vector<8xf32> to vector<8x1xf32>
    %30 = vector.broadcast %29 : vector<8x1xf32> to vector<8x8xf32>
    %31 = arith.subf %27, %30 : vector<8x8xf32>
    %32 = math.exp %31 : vector<8x8xf32>
    %cst_29 = arith.constant dense<0.000000e+00> : vector<8xf32>
    %33 = vector.multi_reduction <add>, %32, %cst_29 [1] : vector<8x8xf32> to vector<8xf32>
    %34 = vector.shape_cast %33 : vector<8xf32> to vector<8x1xf32>
    %35 = tpu.reciprocal %34 {approx = true} : vector<8x1xf32> -> vector<8x1xf32>
    %36 = vector.broadcast %35 : vector<8x1xf32> to vector<8x8xf32>
    %37 = arith.mulf %32, %36 : vector<8x8xf32>
    %c0_30 = arith.constant 0 : index
    %c0_31 = arith.constant 0 : index
    %c0_32 = arith.constant 0 : index
    %c0_33 = arith.constant 0 : index
    %38 = vector.load %arg12[%c0_30, %c0_31, %c0_32, %c0_33] : memref<1x4x8x8xf32, #tpu.memory_space<vmem>>, vector<1x1x8x8xf32>
    %39 = vector.shape_cast %38 : vector<1x1x8x8xf32> to vector<8x8xf32>
    %40 = vector.shape_cast %37 : vector<8x8xf32> to vector<1x1x8x8xf32>
    tpu.vector_store %arg12[%c0_30, %c0_31, %c0_32, %c0_33], %40 {strides = array<i32>} : memref<1x4x8x8xf32, #tpu.memory_space<vmem>>, vector<1x1x8x8xf32>,
    %cst_34 = arith.constant dense<0.000000e+00> : vector<8x8xf32>
    %41 = tpu.matmul %37, %25, %cst_34 {dimension_numbers = #tpu.dot_dimension_numbers<[1], [0], [0], [1], [0, 0, 1, 1], [], []>} : vector<8x8xf32>, vector<8x8xf32>, vector<8x8xf32> -> vector<8x8xf32>
    %c0_35 = arith.constant 0 : index
    %c0_36 = arith.constant 0 : index
    %c0_37 = arith.constant 0 : index
    %42 = vector.load %arg8[%c0_35, %c0_36, %c0_37] : memref<4x8x32xf32, #tpu.memory_space<vmem>>, vector<1x8x32xf32>
    %43 = vector.shape_cast %42 : vector<1x8x32xf32> to vector<8x32xf32>
    %cst_38 = arith.constant dense<0.000000e+00> : vector<8x32xf32>
    %44 = tpu.matmul %41, %43, %cst_38 {dimension_numbers = #tpu.dot_dimension_numbers<[1], [0], [0], [1], [0, 0, 1, 1], [], []>} : vector<8x8xf32>, vector<8x32xf32>, vector<8x32xf32> -> vector<8x32xf32>
    %45 = arith.addf %4, %44 : vector<8x32xf32>
    %c1 = arith.constant 1 : index
    %c0_39 = arith.constant 0 : index
    %c0_40 = arith.constant 0 : index
    %46 = vector.load %arg2[%c1, %c0_39, %c0_40] : memref<4x32x8xf32, #tpu.memory_space<vmem>>, vector<1x32x8xf32>
    %47 = vector.shape_cast %46 : vector<1x32x8xf32> to vector<32x8xf32>
    %cst_41 = arith.constant dense<0.000000e+00> : vector<8x8xf32>
    %48 = tpu.matmul %1, %47, %cst_41 {dimension_numbers = #tpu.dot_dimension_numbers<[1], [0], [0], [1], [0, 0, 1, 1], [], []>} : vector<8x32xf32>, vector<32x8xf32>, vector<8x8xf32> -> vector<8x8xf32>
    %c1_42 = arith.constant 1 : index
    %c0_43 = arith.constant 0 : index
    %c0_44 = arith.constant 0 : index
    %49 = vector.load %arg5[%c1_42, %c0_43, %c0_44] : memref<4x1x8xf32, #tpu.memory_space<vmem>>, vector<1x1x8xf32>
    %50 = vector.shape_cast %49 : vector<1x1x8xf32> to vector<1x8xf32>
    %51 = vector.broadcast %50 : vector<1x8xf32> to vector<8x8xf32>
    %52 = arith.addf %48, %51 : vector<8x8xf32>
    %c1_45 = arith.constant 1 : index
    %c0_46 = arith.constant 0 : index
    %c0_47 = arith.constant 0 : index
    %53 = vector.load %arg3[%c1_45, %c0_46, %c0_47] : memref<4x32x8xf32, #tpu.memory_space<vmem>>, vector<1x32x8xf32>
    %54 = vector.shape_cast %53 : vector<1x32x8xf32> to vector<32x8xf32>
    %cst_48 = arith.constant dense<0.000000e+00> : vector<8x8xf32>
    %55 = tpu.matmul %1, %54, %cst_48 {dimension_numbers = #tpu.dot_dimension_numbers<[1], [0], [0], [1], [0, 0, 1, 1], [], []>} : vector<8x32xf32>, vector<32x8xf32>, vector<8x8xf32> -> vector<8x8xf32>
    %c1_49 = arith.constant 1 : index
    %c0_50 = arith.constant 0 : index
    %c0_51 = arith.constant 0 : index
    %56 = vector.load %arg6[%c1_49, %c0_50, %c0_51] : memref<4x1x8xf32, #tpu.memory_space<vmem>>, vector<1x1x8xf32>
    %57 = vector.shape_cast %56 : vector<1x1x8xf32> to vector<1x8xf32>
    %58 = vector.broadcast %57 : vector<1x8xf32> to vector<8x8xf32>
    %59 = arith.addf %55, %58 : vector<8x8xf32>
    %c1_52 = arith.constant 1 : index
    %c0_53 = arith.constant 0 : index
    %c0_54 = arith.constant 0 : index
    %60 = vector.load %arg4[%c1_52, %c0_53, %c0_54] : memref<4x32x8xf32, #tpu.memory_space<vmem>>, vector<1x32x8xf32>
    %61 = vector.shape_cast %60 : vector<1x32x8xf32> to vector<32x8xf32>
    %cst_55 = arith.constant dense<0.000000e+00> : vector<8x8xf32>
    %62 = tpu.matmul %1, %61, %cst_55 {dimension_numbers = #tpu.dot_dimension_numbers<[1], [0], [0], [1], [0, 0, 1, 1], [], []>} : vector<8x32xf32>, vector<32x8xf32>, vector<8x8xf32> -> vector<8x8xf32>
    %c1_56 = arith.constant 1 : index
    %c0_57 = arith.constant 0 : index
    %c0_58 = arith.constant 0 : index
    %63 = vector.load %arg7[%c1_56, %c0_57, %c0_58] : memref<4x1x8xf32, #tpu.memory_space<vmem>>, vector<1x1x8xf32>
    %64 = vector.shape_cast %63 : vector<1x1x8xf32> to vector<1x8xf32>
    %65 = vector.broadcast %64 : vector<1x8xf32> to vector<8x8xf32>
    %66 = arith.addf %62, %65 : vector<8x8xf32>
    %cst_59 = arith.constant dense<0.000000e+00> : vector<8x8xf32>
    %67 = tpu.matmul %52, %59, %cst_59 {dimension_numbers = #tpu.dot_dimension_numbers<[1], [1], [0], [0], [0, 0, 1, 0], [], []>} : vector<8x8xf32>, vector<8x8xf32>, vector<8x8xf32> -> vector<8x8xf32>
    %68 = arith.addf %67, %3 : vector<8x8xf32>
    %cst_60 = arith.constant dense<0xFF800000> : vector<8xf32>
    %69 = vector.multi_reduction <maximumf>, %68, %cst_60 [1] : vector<8x8xf32> to vector<8xf32>
    %70 = vector.shape_cast %69 : vector<8xf32> to vector<8x1xf32>
    %71 = vector.broadcast %70 : vector<8x1xf32> to vector<8x8xf32>
    %72 = arith.subf %68, %71 : vector<8x8xf32>
    %73 = math.exp %72 : vector<8x8xf32>
    %cst_61 = arith.constant dense<0.000000e+00> : vector<8xf32>
    %74 = vector.multi_reduction <add>, %73, %cst_61 [1] : vector<8x8xf32> to vector<8xf32>
    %75 = vector.shape_cast %74 : vector<8xf32> to vector<8x1xf32>
    %76 = tpu.reciprocal %75 {approx = true} : vector<8x1xf32> -> vector<8x1xf32>
    %77 = vector.broadcast %76 : vector<8x1xf32> to vector<8x8xf32>
    %78 = arith.mulf %73, %77 : vector<8x8xf32>
    %c0_62 = arith.constant 0 : index
    %c1_63 = arith.constant 1 : index
    %c0_64 = arith.constant 0 : index
    %c0_65 = arith.constant 0 : index
    %79 = vector.load %arg12[%c0_62, %c1_63, %c0_64, %c0_65] : memref<1x4x8x8xf32, #tpu.memory_space<vmem>>, vector<1x1x8x8xf32>
    %80 = vector.shape_cast %79 : vector<1x1x8x8xf32> to vector<8x8xf32>
    %81 = vector.shape_cast %78 : vector<8x8xf32> to vector<1x1x8x8xf32>
    tpu.vector_store %arg12[%c0_62, %c1_63, %c0_64, %c0_65], %81 {strides = array<i32>} : memref<1x4x8x8xf32, #tpu.memory_space<vmem>>, vector<1x1x8x8xf32>,
    %cst_66 = arith.constant dense<0.000000e+00> : vector<8x8xf32>
    %82 = tpu.matmul %78, %66, %cst_66 {dimension_numbers = #tpu.dot_dimension_numbers<[1], [0], [0], [1], [0, 0, 1, 1], [], []>} : vector<8x8xf32>, vector<8x8xf32>, vector<8x8xf32> -> vector<8x8xf32>
    %c1_67 = arith.constant 1 : index
    %c0_68 = arith.constant 0 : index
    %c0_69 = arith.constant 0 : index
    %83 = vector.load %arg8[%c1_67, %c0_68, %c0_69] : memref<4x8x32xf32, #tpu.memory_space<vmem>>, vector<1x8x32xf32>
    %84 = vector.shape_cast %83 : vector<1x8x32xf32> to vector<8x32xf32>
    %cst_70 = arith.constant dense<0.000000e+00> : vector<8x32xf32>
    %85 = tpu.matmul %82, %84, %cst_70 {dimension_numbers = #tpu.dot_dimension_numbers<[1], [0], [0], [1], [0, 0, 1, 1], [], []>} : vector<8x8xf32>, vector<8x32xf32>, vector<8x32xf32> -> vector<8x32xf32>
    %86 = arith.addf %45, %85 : vector<8x32xf32>
    %c2 = arith.constant 2 : index
    %c0_71 = arith.constant 0 : index
    %c0_72 = arith.constant 0 : index
    %87 = vector.load %arg2[%c2, %c0_71, %c0_72] : memref<4x32x8xf32, #tpu.memory_space<vmem>>, vector<1x32x8xf32>
    %88 = vector.shape_cast %87 : vector<1x32x8xf32> to vector<32x8xf32>
    %cst_73 = arith.constant dense<0.000000e+00> : vector<8x8xf32>
    %89 = tpu.matmul %1, %88, %cst_73 {dimension_numbers = #tpu.dot_dimension_numbers<[1], [0], [0], [1], [0, 0, 1, 1], [], []>} : vector<8x32xf32>, vector<32x8xf32>, vector<8x8xf32> -> vector<8x8xf32>
    %c2_74 = arith.constant 2 : index
    %c0_75 = arith.constant 0 : index
    %c0_76 = arith.constant 0 : index
    %90 = vector.load %arg5[%c2_74, %c0_75, %c0_76] : memref<4x1x8xf32, #tpu.memory_space<vmem>>, vector<1x1x8xf32>
    %91 = vector.shape_cast %90 : vector<1x1x8xf32> to vector<1x8xf32>
    %92 = vector.broadcast %91 : vector<1x8xf32> to vector<8x8xf32>
    %93 = arith.addf %89, %92 : vector<8x8xf32>
    %c2_77 = arith.constant 2 : index
    %c0_78 = arith.constant 0 : index
    %c0_79 = arith.constant 0 : index
    %94 = vector.load %arg3[%c2_77, %c0_78, %c0_79] : memref<4x32x8xf32, #tpu.memory_space<vmem>>, vector<1x32x8xf32>
    %95 = vector.shape_cast %94 : vector<1x32x8xf32> to vector<32x8xf32>
    %cst_80 = arith.constant dense<0.000000e+00> : vector<8x8xf32>
    %96 = tpu.matmul %1, %95, %cst_80 {dimension_numbers = #tpu.dot_dimension_numbers<[1], [0], [0], [1], [0, 0, 1, 1], [], []>} : vector<8x32xf32>, vector<32x8xf32>, vector<8x8xf32> -> vector<8x8xf32>
    %c2_81 = arith.constant 2 : index
    %c0_82 = arith.constant 0 : index
    %c0_83 = arith.constant 0 : index
    %97 = vector.load %arg6[%c2_81, %c0_82, %c0_83] : memref<4x1x8xf32, #tpu.memory_space<vmem>>, vector<1x1x8xf32>
    %98 = vector.shape_cast %97 : vector<1x1x8xf32> to vector<1x8xf32>
    %99 = vector.broadcast %98 : vector<1x8xf32> to vector<8x8xf32>
    %100 = arith.addf %96, %99 : vector<8x8xf32>
    %c2_84 = arith.constant 2 : index
    %c0_85 = arith.constant 0 : index
    %c0_86 = arith.constant 0 : index
    %101 = vector.load %arg4[%c2_84, %c0_85, %c0_86] : memref<4x32x8xf32, #tpu.memory_space<vmem>>, vector<1x32x8xf32>
    %102 = vector.shape_cast %101 : vector<1x32x8xf32> to vector<32x8xf32>
    %cst_87 = arith.constant dense<0.000000e+00> : vector<8x8xf32>
    %103 = tpu.matmul %1, %102, %cst_87 {dimension_numbers = #tpu.dot_dimension_numbers<[1], [0], [0], [1], [0, 0, 1, 1], [], []>} : vector<8x32xf32>, vector<32x8xf32>, vector<8x8xf32> -> vector<8x8xf32>
    %c2_88 = arith.constant 2 : index
    %c0_89 = arith.constant 0 : index
    %c0_90 = arith.constant 0 : index
    %104 = vector.load %arg7[%c2_88, %c0_89, %c0_90] : memref<4x1x8xf32, #tpu.memory_space<vmem>>, vector<1x1x8xf32>
    %105 = vector.shape_cast %104 : vector<1x1x8xf32> to vector<1x8xf32>
    %106 = vector.broadcast %105 : vector<1x8xf32> to vector<8x8xf32>
    %107 = arith.addf %103, %106 : vector<8x8xf32>
    %cst_91 = arith.constant dense<0.000000e+00> : vector<8x8xf32>
    %108 = tpu.matmul %93, %100, %cst_91 {dimension_numbers = #tpu.dot_dimension_numbers<[1], [1], [0], [0], [0, 0, 1, 0], [], []>} : vector<8x8xf32>, vector<8x8xf32>, vector<8x8xf32> -> vector<8x8xf32>
    %109 = arith.addf %108, %3 : vector<8x8xf32>
    %cst_92 = arith.constant dense<0xFF800000> : vector<8xf32>
    %110 = vector.multi_reduction <maximumf>, %109, %cst_92 [1] : vector<8x8xf32> to vector<8xf32>
    %111 = vector.shape_cast %110 : vector<8xf32> to vector<8x1xf32>
    %112 = vector.broadcast %111 : vector<8x1xf32> to vector<8x8xf32>
    %113 = arith.subf %109, %112 : vector<8x8xf32>
    %114 = math.exp %113 : vector<8x8xf32>
    %cst_93 = arith.constant dense<0.000000e+00> : vector<8xf32>
    %115 = vector.multi_reduction <add>, %114, %cst_93 [1] : vector<8x8xf32> to vector<8xf32>
    %116 = vector.shape_cast %115 : vector<8xf32> to vector<8x1xf32>
    %117 = tpu.reciprocal %116 {approx = true} : vector<8x1xf32> -> vector<8x1xf32>
    %118 = vector.broadcast %117 : vector<8x1xf32> to vector<8x8xf32>
    %119 = arith.mulf %114, %118 : vector<8x8xf32>
    %c0_94 = arith.constant 0 : index
    %c2_95 = arith.constant 2 : index
    %c0_96 = arith.constant 0 : index
    %c0_97 = arith.constant 0 : index
    %120 = vector.load %arg12[%c0_94, %c2_95, %c0_96, %c0_97] : memref<1x4x8x8xf32, #tpu.memory_space<vmem>>, vector<1x1x8x8xf32>
    %121 = vector.shape_cast %120 : vector<1x1x8x8xf32> to vector<8x8xf32>
    %122 = vector.shape_cast %119 : vector<8x8xf32> to vector<1x1x8x8xf32>
    tpu.vector_store %arg12[%c0_94, %c2_95, %c0_96, %c0_97], %122 {strides = array<i32>} : memref<1x4x8x8xf32, #tpu.memory_space<vmem>>, vector<1x1x8x8xf32>,
    %cst_98 = arith.constant dense<0.000000e+00> : vector<8x8xf32>
    %123 = tpu.matmul %119, %107, %cst_98 {dimension_numbers = #tpu.dot_dimension_numbers<[1], [0], [0], [1], [0, 0, 1, 1], [], []>} : vector<8x8xf32>, vector<8x8xf32>, vector<8x8xf32> -> vector<8x8xf32>
    %c2_99 = arith.constant 2 : index
    %c0_100 = arith.constant 0 : index
    %c0_101 = arith.constant 0 : index
    %124 = vector.load %arg8[%c2_99, %c0_100, %c0_101] : memref<4x8x32xf32, #tpu.memory_space<vmem>>, vector<1x8x32xf32>
    %125 = vector.shape_cast %124 : vector<1x8x32xf32> to vector<8x32xf32>
    %cst_102 = arith.constant dense<0.000000e+00> : vector<8x32xf32>
    %126 = tpu.matmul %123, %125, %cst_102 {dimension_numbers = #tpu.dot_dimension_numbers<[1], [0], [0], [1], [0, 0, 1, 1], [], []>} : vector<8x8xf32>, vector<8x32xf32>, vector<8x32xf32> -> vector<8x32xf32>
    %127 = arith.addf %86, %126 : vector<8x32xf32>
    %c3 = arith.constant 3 : index
    %c0_103 = arith.constant 0 : index
    %c0_104 = arith.constant 0 : index
    %128 = vector.load %arg2[%c3, %c0_103, %c0_104] : memref<4x32x8xf32, #tpu.memory_space<vmem>>, vector<1x32x8xf32>
    %129 = vector.shape_cast %128 : vector<1x32x8xf32> to vector<32x8xf32>
    %cst_105 = arith.constant dense<0.000000e+00> : vector<8x8xf32>
    %130 = tpu.matmul %1, %129, %cst_105 {dimension_numbers = #tpu.dot_dimension_numbers<[1], [0], [0], [1], [0, 0, 1, 1], [], []>} : vector<8x32xf32>, vector<32x8xf32>, vector<8x8xf32> -> vector<8x8xf32>
    %c3_106 = arith.constant 3 : index
    %c0_107 = arith.constant 0 : index
    %c0_108 = arith.constant 0 : index
    %131 = vector.load %arg5[%c3_106, %c0_107, %c0_108] : memref<4x1x8xf32, #tpu.memory_space<vmem>>, vector<1x1x8xf32>
    %132 = vector.shape_cast %131 : vector<1x1x8xf32> to vector<1x8xf32>
    %133 = vector.broadcast %132 : vector<1x8xf32> to vector<8x8xf32>
    %134 = arith.addf %130, %133 : vector<8x8xf32>
    %c3_109 = arith.constant 3 : index
    %c0_110 = arith.constant 0 : index
    %c0_111 = arith.constant 0 : index
    %135 = vector.load %arg3[%c3_109, %c0_110, %c0_111] : memref<4x32x8xf32, #tpu.memory_space<vmem>>, vector<1x32x8xf32>
    %136 = vector.shape_cast %135 : vector<1x32x8xf32> to vector<32x8xf32>
    %cst_112 = arith.constant dense<0.000000e+00> : vector<8x8xf32>
    %137 = tpu.matmul %1, %136, %cst_112 {dimension_numbers = #tpu.dot_dimension_numbers<[1], [0], [0], [1], [0, 0, 1, 1], [], []>} : vector<8x32xf32>, vector<32x8xf32>, vector<8x8xf32> -> vector<8x8xf32>
    %c3_113 = arith.constant 3 : index
    %c0_114 = arith.constant 0 : index
    %c0_115 = arith.constant 0 : index
    %138 = vector.load %arg6[%c3_113, %c0_114, %c0_115] : memref<4x1x8xf32, #tpu.memory_space<vmem>>, vector<1x1x8xf32>
    %139 = vector.shape_cast %138 : vector<1x1x8xf32> to vector<1x8xf32>
    %140 = vector.broadcast %139 : vector<1x8xf32> to vector<8x8xf32>
    %141 = arith.addf %137, %140 : vector<8x8xf32>
    %c3_116 = arith.constant 3 : index
    %c0_117 = arith.constant 0 : index
    %c0_118 = arith.constant 0 : index
    %142 = vector.load %arg4[%c3_116, %c0_117, %c0_118] : memref<4x32x8xf32, #tpu.memory_space<vmem>>, vector<1x32x8xf32>
    %143 = vector.shape_cast %142 : vector<1x32x8xf32> to vector<32x8xf32>
    %cst_119 = arith.constant dense<0.000000e+00> : vector<8x8xf32>
    %144 = tpu.matmul %1, %143, %cst_119 {dimension_numbers = #tpu.dot_dimension_numbers<[1], [0], [0], [1], [0, 0, 1, 1], [], []>} : vector<8x32xf32>, vector<32x8xf32>, vector<8x8xf32> -> vector<8x8xf32>
    %c3_120 = arith.constant 3 : index
    %c0_121 = arith.constant 0 : index
    %c0_122 = arith.constant 0 : index
    %145 = vector.load %arg7[%c3_120, %c0_121, %c0_122] : memref<4x1x8xf32, #tpu.memory_space<vmem>>, vector<1x1x8xf32>
    %146 = vector.shape_cast %145 : vector<1x1x8xf32> to vector<1x8xf32>
    %147 = vector.broadcast %146 : vector<1x8xf32> to vector<8x8xf32>
    %148 = arith.addf %144, %147 : vector<8x8xf32>
    %cst_123 = arith.constant dense<0.000000e+00> : vector<8x8xf32>
    %149 = tpu.matmul %134, %141, %cst_123 {dimension_numbers = #tpu.dot_dimension_numbers<[1], [1], [0], [0], [0, 0, 1, 0], [], []>} : vector<8x8xf32>, vector<8x8xf32>, vector<8x8xf32> -> vector<8x8xf32>
    %150 = arith.addf %149, %3 : vector<8x8xf32>
    %cst_124 = arith.constant dense<0xFF800000> : vector<8xf32>
    %151 = vector.multi_reduction <maximumf>, %150, %cst_124 [1] : vector<8x8xf32> to vector<8xf32>
    %152 = vector.shape_cast %151 : vector<8xf32> to vector<8x1xf32>
    %153 = vector.broadcast %152 : vector<8x1xf32> to vector<8x8xf32>
    %154 = arith.subf %150, %153 : vector<8x8xf32>
    %155 = math.exp %154 : vector<8x8xf32>
    %cst_125 = arith.constant dense<0.000000e+00> : vector<8xf32>
    %156 = vector.multi_reduction <add>, %155, %cst_125 [1] : vector<8x8xf32> to vector<8xf32>
    %157 = vector.shape_cast %156 : vector<8xf32> to vector<8x1xf32>
    %158 = tpu.reciprocal %157 {approx = true} : vector<8x1xf32> -> vector<8x1xf32>
    %159 = vector.broadcast %158 : vector<8x1xf32> to vector<8x8xf32>
    %160 = arith.mulf %155, %159 : vector<8x8xf32>
    %c0_126 = arith.constant 0 : index
    %c3_127 = arith.constant 3 : index
    %c0_128 = arith.constant 0 : index
    %c0_129 = arith.constant 0 : index
    %161 = vector.load %arg12[%c0_126, %c3_127, %c0_128, %c0_129] : memref<1x4x8x8xf32, #tpu.memory_space<vmem>>, vector<1x1x8x8xf32>
    %162 = vector.shape_cast %161 : vector<1x1x8x8xf32> to vector<8x8xf32>
    %163 = vector.shape_cast %160 : vector<8x8xf32> to vector<1x1x8x8xf32>
    tpu.vector_store %arg12[%c0_126, %c3_127, %c0_128, %c0_129], %163 {strides = array<i32>} : memref<1x4x8x8xf32, #tpu.memory_space<vmem>>, vector<1x1x8x8xf32>,
    %cst_130 = arith.constant dense<0.000000e+00> : vector<8x8xf32>
    %164 = tpu.matmul %160, %148, %cst_130 {dimension_numbers = #tpu.dot_dimension_numbers<[1], [0], [0], [1], [0, 0, 1, 1], [], []>} : vector<8x8xf32>, vector<8x8xf32>, vector<8x8xf32> -> vector<8x8xf32>
    %c3_131 = arith.constant 3 : index
    %c0_132 = arith.constant 0 : index
    %c0_133 = arith.constant 0 : index
    %165 = vector.load %arg8[%c3_131, %c0_132, %c0_133] : memref<4x8x32xf32, #tpu.memory_space<vmem>>, vector<1x8x32xf32>
    %166 = vector.shape_cast %165 : vector<1x8x32xf32> to vector<8x32xf32>
    %cst_134 = arith.constant dense<0.000000e+00> : vector<8x32xf32>
    %167 = tpu.matmul %164, %166, %cst_134 {dimension_numbers = #tpu.dot_dimension_numbers<[1], [0], [0], [1], [0, 0, 1, 1], [], []>} : vector<8x8xf32>, vector<8x32xf32>, vector<8x32xf32> -> vector<8x32xf32>
    %168 = arith.addf %127, %167 : vector<8x32xf32>
    %c0_135 = arith.constant 0 : index
    %c0_136 = arith.constant 0 : index
    %169 = vector.load %arg9[%c0_135, %c0_136] : memref<1x32xf32, #tpu.memory_space<vmem>>, vector<1x32xf32>
    %170 = vector.broadcast %169 : vector<1x32xf32> to vector<8x32xf32>
    %171 = arith.addf %168, %170 : vector<8x32xf32>
    %c0_137 = arith.constant 0 : index
    %c0_138 = arith.constant 0 : index
    %c0_139 = arith.constant 0 : index
    %172 = vector.load %arg11[%c0_137, %c0_138, %c0_139] : memref<1x8x32xf32, #tpu.memory_space<vmem>>, vector<1x8x32xf32>
    %173 = vector.shape_cast %172 : vector<1x8x32xf32> to vector<8x32xf32>
    %174 = vector.shape_cast %171 : vector<8x32xf32> to vector<1x8x32xf32>
    tpu.vector_store %arg11[%c0_137, %c0_138, %c0_139], %174 {strides = array<i32>} : memref<1x8x32xf32, #tpu.memory_space<vmem>>, vector<1x8x32xf32>,
    return
  }
  func.func @transform_0(%arg0: i32) -> (i32, i32, i32) {
    %c0_i32 = arith.constant 0 : i32
    %c0_i32_0 = arith.constant 0 : i32
    %c0_i32_1 = arith.constant 0 : i32
    return %arg0, %c0_i32, %c0_i32_0 : i32, i32, i32
  }
  func.func @transform_1(%arg0: i32) -> (i32, i32, i32) {
    %c0_i32 = arith.constant 0 : i32
    %c0_i32_0 = arith.constant 0 : i32
    %c0_i32_1 = arith.constant 0 : i32
    %c0_i32_2 = arith.constant 0 : i32
    return %c0_i32, %c0_i32_0, %c0_i32_1 : i32, i32, i32
  }
  func.func @transform_2(%arg0: i32) -> (i32, i32, i32) {
    %c0_i32 = arith.constant 0 : i32
    %c0_i32_0 = arith.constant 0 : i32
    %c0_i32_1 = arith.constant 0 : i32
    %c0_i32_2 = arith.constant 0 : i32
    return %c0_i32, %c0_i32_0, %c0_i32_1 : i32, i32, i32
  }
  func.func @transform_3(%arg0: i32) -> (i32, i32, i32) {
    %c0_i32 = arith.constant 0 : i32
    %c0_i32_0 = arith.constant 0 : i32
    %c0_i32_1 = arith.constant 0 : i32
    %c0_i32_2 = arith.constant 0 : i32
    return %c0_i32, %c0_i32_0, %c0_i32_1 : i32, i32, i32
  }
  func.func @transform_4(%arg0: i32) -> (i32, i32, i32) {
    %c0_i32 = arith.constant 0 : i32
    %c0_i32_0 = arith.constant 0 : i32
    %c0_i32_1 = arith.constant 0 : i32
    %c0_i32_2 = arith.constant 0 : i32
    return %c0_i32, %c0_i32_0, %c0_i32_1 : i32, i32, i32
  }
  func.func @transform_5(%arg0: i32) -> (i32, i32, i32) {
    %c0_i32 = arith.constant 0 : i32
    %c0_i32_0 = arith.constant 0 : i32
    %c0_i32_1 = arith.constant 0 : i32
    %c0_i32_2 = arith.constant 0 : i32
    return %c0_i32, %c0_i32_0, %c0_i32_1 : i32, i32, i32
  }
  func.func @transform_6(%arg0: i32) -> (i32, i32, i32) {
    %c0_i32 = arith.constant 0 : i32
    %c0_i32_0 = arith.constant 0 : i32
    %c0_i32_1 = arith.constant 0 : i32
    %c0_i32_2 = arith.constant 0 : i32
    return %c0_i32, %c0_i32_0, %c0_i32_1 : i32, i32, i32
  }
  func.func @transform_7(%arg0: i32) -> (i32, i32, i32) {
    %c0_i32 = arith.constant 0 : i32
    %c0_i32_0 = arith.constant 0 : i32
    %c0_i32_1 = arith.constant 0 : i32
    %c0_i32_2 = arith.constant 0 : i32
    return %c0_i32, %c0_i32_0, %c0_i32_1 : i32, i32, i32
  }
  func.func @transform_8(%arg0: i32) -> (i32, i32) {
    %c0_i32 = arith.constant 0 : i32
    %c0_i32_0 = arith.constant 0 : i32
    %c0_i32_1 = arith.constant 0 : i32
    return %c0_i32, %c0_i32_0 : i32, i32
  }
  func.func @transform_9(%arg0: i32) -> (i32, i32, i32, i32) {
    %c0_i32 = arith.constant 0 : i32
    %c0_i32_0 = arith.constant 0 : i32
    %c0_i32_1 = arith.constant 0 : i32
    %c0_i32_2 = arith.constant 0 : i32
    return %arg0, %c0_i32, %c0_i32_0, %c0_i32_1 : i32, i32, i32, i32
  }
  func.func @transform_10(%arg0: i32) -> (i32, i32, i32) {
    %c0_i32 = arith.constant 0 : i32
    %c0_i32_0 = arith.constant 0 : i32
    %c0_i32_1 = arith.constant 0 : i32
    return %arg0, %c0_i32, %c0_i32_0 : i32, i32, i32
  }
  func.func @transform_11(%arg0: i32) -> (i32, i32, i32, i32) {
    %c0_i32 = arith.constant 0 : i32
    %c0_i32_0 = arith.constant 0 : i32
    %c0_i32_1 = arith.constant 0 : i32
    %c0_i32_2 = arith.constant 0 : i32
    return %arg0, %c0_i32, %c0_i32_0, %c0_i32_1 : i32, i32, i32, i32
  }
}

</mosaic_0001>

<bundles_post_ra>
// kernel: tpu_custom_call.1
= control target key start
LH: loop header
LB: loop body
LE: loop exit
PB: predicated region body
PF: predicated region fallthrough
CT: control target
= control target key end

     0   :  { %s3686_s0 = inlined_call_operand.vmem [shape: f32[2,8,32], index: 0, kind: input, shape index: {}]   ;;  %s3687_s1 = inlined_call_operand.vmem [shape: f32[4,32,8], index: 1, kind: input, shape index: {}]   ;;  %s3688_s2 = inlined_call_operand.vmem [shape: f32[4,32,8], index: 2, kind: input, shape index: {}]   ;;  %s3689_s3 = inlined_call_operand.vmem [shape: f32[4,32,8], index: 3, kind: input, shape index: {}]   ;;  %s3690_s4 = inlined_call_operand.vmem [shape: f32[4,1,8], index: 4, kind: input, shape index: {}]   ;;  %s3691_s5 = inlined_call_operand.vmem [shape: f32[4,1,8], index: 5, kind: input, shape index: {}]   ;;  %s3692_s6 = inlined_call_operand.vmem [shape: f32[4,1,8], index: 6, kind: input, shape index: {}]   ;;  %s3693_s7 = inlined_call_operand.vmem [shape: f32[4,8,32], index: 7, kind: input, shape index: {}]   ;;  %s3694_s8 = inlined_call_operand.vmem [shape: f32[1,32], index: 8, kind: input, shape index: {}]   ;;  %s3695_s9 = inlined_call_operand.vmem [shape: f32[2,1,8,8], index: 9, kind: input, shape index: {}]   ;;  %s3696_s10 = inlined_call_operand.hbm [shape: f32[2,8,32], index: 10, kind: output, shape index: {0}]   ;;  %s3697_s11 = inlined_call_operand.hbm [shape: f32[2,4,8,8], index: 11, kind: output, shape index: {1}]  }
   0x1   :  { %3698 = sst [smem:[#allocation8_spill]] %s3686_s0 }
   0x2   :  { %3699 = sst [smem:[#allocation9_spill]] %s3687_s1 }
   0x3   :  { %3700 = sst [smem:[#allocation10_spill]] %s3688_s2 }
   0x4   :  { %3701 = sst [smem:[#allocation11_spill]] %s3689_s3 }
   0x5   :  { %3702 = sst [smem:[#allocation12_spill]] %s3690_s4 }
   0x6   :  { %17 = vsyncpa [#allocation3], 0 }
   0x7   :  { %19 = vsyncpa [#allocation3 + $0x1], 0 }
   0x8   :  { %20 = vsyncpa [#allocation5], 0 }
   0x9   :  { %22 = vsyncpa [#allocation5 + $0x1], 0  ;;  %s3186_s17 = smov 0   ;;  %s3188_s18 = smov 0  }
   0xa   :  { %s3190_s19 = smov 0   ;;  %s3192_s20 = smov 0  }
   0xb LB: > { %s3207_s21 = sadd.s32 4294967295, %s3117_s20   ;;  %s2502_s22 = sadd.s32 4294967294, %s3117_s20   ;;  %s3117_s20 = sphi %s3192_s20, %s3714_s20   ;;  %s3113_s19 = sphi %s3190_s19, %s3713_s19   ;;  %s3109_s18 = sphi %s3188_s18, %s3712_s18   ;;  %s3105_s17 = sphi %s3186_s17, %s3711_s17  }
   0xc   : > { %s3211_s23 = sadd.s32 1, %s3117_s20   ;;  %s255_s24 = sadd.s32 1, %s3113_s19 }
   0xd   : > { %s252_s25 = ssub.s32 %s3117_s20, %s3211_s23  ;;  %p265_p0 = scmp.ne.s32.totalorder %s3113_s19, %s3109_s18 }
   0xe   : > { %p253_p1 = scmp.eq.s32.totalorder %s252_s25, 0  ;;  %p266_p2 = scmp.eq.s32.totalorder %s3207_s21, 1 }
   0xf   : > { %p271_p3 = scmp.ne.s32.totalorder %s3109_s18, %s3105_s17  ;;  %p272_p4 = scmp.eq.s32.totalorder %s2502_s22, 1 }
  0x10   : > { %s3222_s26 = scalar_select %p253_p1, %s3113_s19, %s255_s24  }
  0x11   : > { %p3224_p5 = por %p266_p2, %p265_p0  ;;  %p3228_p6 = por %p272_p4, %p271_p3 }
  0x12   : > { %p2505_p7 = scmp.ge.s32.totalorder %s3117_s20, 1  ;;  %p354_p8 = scmp.lt.s32.totalorder %s3117_s20, 3 }
  0x14   : > { %p355_p9 = pnand %p2505_p7, %p354_p8 }
  0x15   : > { %s3705_s2 = sld [smem:[#allocation10_spill]] (!%p355_p9)  ;;  %s3706_s1 = sld [smem:[#allocation9_spill]] (!%p355_p9)  ;;  %v3119_v3 = vmov (!%p355_p9), 0.0|0.0   ;;  %vm3120_vm0 = vmmov (!%p355_p9), 0   ;;  %v3121_v11 = vmov (!%p355_p9), 0.0   ;;  %vm423_vm1 = vcmask (!%p355_p9), 261120  }
  0x16   : > { %358 = sbr.rel (%p355_p9) target bundleno = 3904 (0xf40), region = 60  ;;  %2892 = vmatprep.subr.bf16.mxu1 (!%p355_p9), %v3119_v3  ;;  %2886 = vmatprep.subr.bf16.mxu0 (!%p355_p9), %v3119_v3  ;;  %p402_p10 = scmp.lt.s32.totalorder (!%p355_p9), %s3207_s21, 1  ;;  %v2512_v15 = vld [vmem:[%s3691_s5] ss:$0 sm:$0xff] (!%p355_p9)  ;;  %vm659_vm2 = vcmask (!%p355_p9), 64512  }
  0x17   : > { %2713 = vmatprep.mubr.msk.f32.mxu1 (!%p355_p9), %vm3120_vm0, %v3121_v11  ;;  %2702 = vmatprep.mubr.msk.f32.mxu0 (!%p355_p9), %vm3120_vm0, %v3121_v11  ;;  %s3707_s0 = sld [smem:[#allocation8_spill]] (!%p355_p9)  ;;  %s3708_s4 = sld [smem:[#allocation12_spill]] (!%p355_p9)  ;;  %v2514_v40 = vld [vmem:[%s3692_s6] ss:$0 sm:$0xff] (!%p355_p9)  ;;  %v2531_v62 = vld [vmem:[%s3691_s5 + $0x1] ss:$0 sm:$0xff] (!%p355_p9) }
  0x18   : > { %s3709_s3 = sld [smem:[#allocation11_spill]] (!%p355_p9)  ;;  %s3122_s30 = smov (!%p355_p9), [#allocation4]  }
  0x1b   : > { %v497_v0 = vld [vmem:[%s3705_s2] sm:$0xff] (!%p355_p9)  ;;  %v498_v1 = vld [vmem:[%s3705_s2 + $0x8] sm:$0xff] (!%p355_p9)  ;;  %v499_v6 = vld [vmem:[%s3705_s2 + $0x10] sm:$0xff] (!%p355_p9) }
  0x1c   : > { %v412_v2 = vld [vmem:[%s3706_s1] sm:$0xff] (!%p355_p9)  ;;  %v2893_v4 = vpack.c.bf16 (!%p355_p9), %v498_v1, %v497_v0  ;;  %v413_v5 = vld [vmem:[%s3706_s1 + $0x8] sm:$0xff] (!%p355_p9)  ;;  %v500_v7 = vld [vmem:[%s3705_s2 + $0x18] sm:$0xff] (!%p355_p9) }
  0x1d   : > { %v2887_v8 = vpack.c.bf16 %v413_v5, %v412_v2  ;;  %v414_v9 = vld [vmem:[%s3706_s1 + $0x10] sm:$0xff]  ;;  %v415_v10 = vld [vmem:[%s3706_s1 + $0x18] sm:$0xff]  ;;  %v2896_v12 = vpack.c.bf16 %v500_v7, %v499_v6  ;;  %s3266_s16 = scalar_select %p402_p10, %s3207_s21, 1  ;;  %v2510_v16 = vld [vmem:[%s3708_s4] ss:$0 sm:$0xff] }
  0x1e   : > { %2894 = vmatpush3.bf16.msra.mxu1 %v2893_v4  ;;  %v2890_v13 = vpack.c.bf16 %v415_v10, %v414_v9  ;;  %v578_v23 = vld [vmem:[%s3709_s3] sm:$0xff]  ;;  %v579_v24 = vld [vmem:[%s3709_s3 + $0x8] sm:$0xff]  ;;  %v580_v25 = vld [vmem:[%s3709_s3 + $0x10] sm:$0xff] }
  0x1f   : > { %2888 = vmatpush3.bf16.msra.mxu0 %v2887_v8  ;;  %2895 = vmatprep.subr.bf16.mxu1 %v3119_v3  ;;  %s2508_s22 = sshll.u32 %s3266_s16, 3  ;;  %v2899_v26 = vpack.c.bf16 %v579_v24, %v578_v23  ;;  %v581_v27 = vld [vmem:[%s3709_s3 + $0x18] sm:$0xff]  ;;  %v2519_v43 = vld [vmem:[%s3706_s1 + $0x20] sm:$0xff]  ;;  %v2520_v44 = vld [vmem:[%s3706_s1 + $0x28] sm:$0xff]  ;;  %s3350_s16 = sand.u32 1, %s3109_s18  }
  0x20   : > { %2889 = vmatprep.subr.bf16.mxu0 %v3119_v3  ;;  %s405_s29 = scalar_lea.vmem %s3707_s0, %s2508_s22  ;;  %v2902_v28 = vpack.c.bf16 %v581_v27, %v580_v25  ;;  %s409_s25 = scalar_lea.vmem %s3695_s9, %s2508_s22  ;;  %v2905_v45 = vpack.c.bf16 %v2520_v44, %v2519_v43  ;;  %v2521_v46 = vld [vmem:[%s3706_s1 + $0x30] sm:$0xff]  ;;  %v2522_v47 = vld [vmem:[%s3706_s1 + $0x38] sm:$0xff]  ;;  %v2526_v50 = vld [vmem:[%s3705_s2 + $0x20] sm:$0xff] }
  0x21   : > { %v3276_v14 = vld [vmem:[%s405_s29] sm:$0xff]  ;;  %v2908_v48 = vpack.c.bf16 %v2522_v47, %v2521_v46  ;;  %v2527_v51 = vld [vmem:[%s3705_s2 + $0x28] sm:$0xff]  ;;  %s2507_s13 = sshll.u32 %s3350_s16, 5  ;;  %v2528_v55 = vld [vmem:[%s3705_s2 + $0x30] sm:$0xff]  ;;  %s3027_s0 = sshll.u32 %s3122_s30, 4  ;;  %s3028_s0 = int_to_ptr.vmem [resolvable:$false] %s3027_s0 }
  0x22   : > { %2897 = vmatpush3.bf16.msra.mxu1 %v2896_v12  ;;  %v3322_v29 = vld [vmem:[%s409_s25] sm:$0xff]  ;;  %v2911_v53 = vpack.c.bf16 %v2527_v51, %v2526_v50  ;;  %v2529_v56 = vld [vmem:[%s3705_s2 + $0x38] sm:$0xff]  ;;  %s3366_s22 = scalar_lea.vmem [#allocation4], %s2507_s13  ;;  %v2534_v6 = vld [vmem:[%s3709_s3 + $0x28] sm:$0xff]  ;;  %s2609_s13 = sshll.u32 %s3207_s21, 9 }
  0x23   : > { %2891 = vmatpush3.bf16.msra.mxu0 %v2890_v13  ;;  %2727 = vmatprep.subr.mxu1 %v3121_v11  ;;  %v2914_v57 = vpack.c.bf16 %v2529_v56, %v2528_v55  ;;  %v2524_v63 = vld [vmem:[%s3708_s4 + $0x1] ss:$0 sm:$0xff]  ;;  %v2535_v7 = vld [vmem:[%s3709_s3 + $0x30] sm:$0xff]  ;;  %v2536_v9 = vld [vmem:[%s3709_s3 + $0x38] sm:$0xff]  ;;  %s2396_s12 = sshll.u32 %s3366_s22, 4  ;;  %s3607_s24 = scalar_lea.hbm %s3697_s11, %s2609_s13  ;;  %s3602_s12 = int_to_ptr.vmem [resolvable:$true] %s2396_s12 }
  0x24   : > { %2898 = vmatprep.subr.bf16.mxu0 %v3119_v3  ;;  %v2533_v5 = vld [vmem:[%s3709_s3 + $0x20] sm:$0xff]  ;;  %v2920_v10 = vpack.c.bf16 %v2536_v9, %v2535_v7  ;;  %s3023_s29 = scalar_lea.vmem %s3602_s12, 512  ;;  %p3030_p0 = scmp.lt.s32.totalorder %s3602_s12, %s3028_s0 }
  0x25   : > { %2714 = vmatmul.mubr.msk.f32.vlgmr.msra.gmra.mrb[0].mxu1 %vm423_vm1, %v3276_v14  ;;  %v2917_v8 = vpack.c.bf16 %v2534_v6, %v2533_v5  ;;  %v2538_v23 = vld [vmem:[%s3692_s6 + $0x1] ss:$0 sm:$0xff]  ;;  %v2552_v55 = vld [vmem:[%s3708_s4 + $0x2] ss:$0 sm:$0xff]  ;;  %p3024_p11 = scmp.ne.s32.totalorder %s3602_s12, %s3023_s29 }
  0x26   : > { %2703 = vmatmul.mubr.msk.f32.vlgmr.msra.gmra.mrb[0].mxu0 %vm423_vm1, %v3276_v14  ;;  %2729 = vmatprep.mubr.msk.f32.mxu1 %vm3120_vm0, %v3121_v11 }
  0x27   : > { %2724 = vmatprep.mubr.msk.f32.mxu0 %vm3120_vm0, %v3121_v11  ;;  %2900 = vmatpush3.bf16.msra.mxu0 %v2899_v26  ;;  %v2544_v26 = vld [vmem:[%s3693_s7 + $0x8] sm:$0xff]  ;;  %p3025_p12 = pnand %p3024_p11, %p3224_p5 }
  0x28   : > { %2901 = vmatprep.subr.bf16.mxu0 %v3119_v3 }
  0x29   : > { %p3026_p13 = pneg %p3025_p12 }
  0x2b   : > { %2903 = vmatpush3.bf16.msra.mxu0 %v2902_v28 }
  0x2c   : > { %2904 = vmatprep.subr.bf16.mxu0 %v3119_v3 }
  0x2e   : > { %2725 = vmatmul.mubr.msk.f32.vlgmr.msra.gmra.mrb[2].mxu0 %vm423_vm1, %v3276_v14 }
  0x2f   : > { %2745 = vmatprep.mubr.msk.f32.mxu0 %vm3120_vm0, %v3121_v11  ;;  %2906 = vmatpush3.bf16.msra.mxu0 %v2905_v45 }
  0x30   : > { %2907 = vmatprep.subr.bf16.mxu0 %v3119_v3 }
  0x33   : > { %2909 = vmatpush3.bf16.msra.mxu0 %v2908_v48  ;;  %v2559_v48 = vld [vmem:[%s3691_s5 + $0x2] ss:$0 sm:$0xff] }
  0x34   : > { %2916 = vmatprep.subr.bf16.mxu0 %v3119_v3 }
  0x36   : > { %2746 = vmatmul.mubr.msk.f32.vlgmr.msra.gmra.mrb[4].mxu0 %vm423_vm1, %v3276_v14 }
  0x37   : > { %2767 = vmatprep.mubr.msk.f32.mxu0 %vm3120_vm0, %v3121_v11  ;;  %2918 = vmatpush3.bf16.msra.mxu0 %v2917_v8 }
  0x38   : > { %2919 = vmatprep.subr.bf16.mxu0 %v3119_v3 }
  0x3b   : > { %2921 = vmatpush3.bf16.msra.mxu0 %v2920_v10 }
  0x3c   : > { %2780 = vmatprep.subr.mxu0 %v3121_v11 }
  0x3e   : > { %2768 = vmatmul.mubr.msk.f32.vlgmr.msra.gmra.mrb[6].mxu0 %vm423_vm1, %v3276_v14 }
  0x3f   : > { %2782 = vmatprep.mubr.msk.f32.mxu0 %vm3120_vm0, %v3121_v11  ;;  %2781 = vmatpush3.msra.mxu0 %v2544_v26 }
  0x40   : > { %2922 = vmatprep.subr.bf16.mxu0 %v3119_v3 }
  0xf8   : > { %v574_v17 = vpop.f32.mrb[0].mxu1 }
  0xf9   : > { %v575_v18 = vadd.f32 %v2512_v15, %v574_v17  ;;  %v2715_v19 = vpop.f32.mrb[1].mxu1  ;;  %v493_v20 = vpop.f32.mrb[0].mxu0 }
  0xfa   : > { %v494_v21 = vadd.f32 %v2510_v16, %v493_v20  ;;  %v2704_v22 = vpop.f32.mrb[1].mxu0 }
  0xfb   : > { %2728 = vmatpush3.xpose.msk.msra.mxu1 %vm659_vm2, %v575_v18 }
  0xfc   : > { %2732 = vmatprep.subr.mxu1 %v3121_v11 }
  0xfe   : > { %2730 = vmatmul.mubr.msk.f32.vlgmr.msra.gmra.mrb[2].mxu1 %vm659_vm2, %v494_v21 }
  0xff   : > { %2734 = vmatprep.mubr.msk.f32.mxu1 %vm3120_vm0, %v3121_v11 }
 0x101   : > { %v655_v39 = vpop.f32.mrb[2].mxu0 }
 0x102   : > { %v2726_v41 = vpop.f32.mrb[3].mxu0  ;;  %v656_v42 = vadd.f32 %v2514_v40, %v655_v39  ;;  %v2548_v39 = vld [vmem:[%s3706_s1 + $0x48] sm:$0xff] }
 0x103   : > { %v2549_v41 = vld [vmem:[%s3706_s1 + $0x50] sm:$0xff] }
 0x104   : > { %2733 = vmatpush3.msra.mxu1 %v656_v42  ;;  %v2550_v42 = vld [vmem:[%s3706_s1 + $0x58] sm:$0xff] }
 0x105   : > { %2910 = vmatprep.subr.bf16.mxu1 %v3119_v3  ;;  %v2926_v45 = vpack.c.bf16 %v2550_v42, %v2549_v41  ;;  %v2586_v41 = vld [vmem:[%s3691_s5 + $0x3] ss:$0 sm:$0xff] }
 0x106   : > { %v2579_v42 = vld [vmem:[%s3708_s4 + $0x3] ss:$0 sm:$0xff] }
 0x109   : > { %v901_v58 = vpop.f32.mrb[4].mxu0 }
 0x10a   : > { %v2747_v59 = vpop.f32.mrb[5].mxu0  ;;  %v902_v4 = vadd.f32 %v2524_v63, %v901_v58  ;;  %v2564_v63 = vld [vmem:[%s3709_s3 + $0x58] sm:$0xff] }
 0x10b   : > { %v2561_v59 = vld [vmem:[%s3709_s3 + $0x40] sm:$0xff] }
 0x111   : > { %v1067_v22 = vpop.f32.mrb[6].mxu0 }
 0x112   : > { %v2769_v24 = vpop.f32.mrb[7].mxu0  ;;  %v1068_v25 = vadd.f32 %v2538_v23, %v1067_v22  ;;  %v2575_v22 = vld [vmem:[%s3706_s1 + $0x68] sm:$0xff] }
 0x113   : > { %v2576_v24 = vld [vmem:[%s3706_s1 + $0x70] sm:$0xff] }
 0x1d1   : > { %v732_v30 = vpop.f32.mrb[2].mxu1 }
 0x1d2   : > { %v733_v31 = vadd.f32 %v732_v30, %v3322_v29  ;;  %v2731_v32 = vpop.f32.mrb[3].mxu1 }
 0x1d3   : > { %v2554_v32 = vld [vmem:[%s3705_s2 + $0x40] sm:$0xff] }
 0x1d4   : > { %v736_v33 = vsel %vm659_vm2, %v733_v31, -inf }
 0x1d5   : > { %737 = vmax.xlane.f32.xlu0 %v736_v33  ;;  %v2555_v33 = vld [vmem:[%s3705_s2 + $0x48] sm:$0xff] }
 0x262   : > { %v738_v34 = vpop.xlane.xlu0 %737 }
 0x263   : > { %v739_v35 = vsub.f32 %v733_v31, %v738_v34  ;;  %v821_v31 = vld [vmem:[%s3693_s7] sm:$0xff]  ;;  %v2929_v34 = vpack.c.bf16 %v2555_v33, %v2554_v32  ;;  %v2584_v32 = vld [vmem:[%s3705_s2 + $0x78] sm:$0xff] }
 0x265   : > { %v740_v36 = vmul.f32 1.442695, %v739_v35  ;;  %v2556_v35 = vld [vmem:[%s3705_s2 + $0x50] sm:$0xff] }
 0x267   : > { %3007 = vpow2.f32 %v740_v36  ;;  %v2557_v36 = vld [vmem:[%s3705_s2 + $0x58] sm:$0xff] }
 0x271   : > { %v3008_v37 = vpop.eup %3007 }
 0x272   : > { %v742_v38 = vsel %vm659_vm2, %v3008_v37, 0.0 }
 0x273   : > { %743 = vadd.xlane.f32.xlu0 %v742_v38  ;;  %v2547_v38 = vld [vmem:[%s3706_s1 + $0x40] sm:$0xff] }
 0x274   : > { %v2923_v40 = vpack.c.bf16 %v2548_v39, %v2547_v38 }
 0x300   : > { %v744_v49 = vpop.xlane.xlu0 %743 }
 0x301   : > { %3009 = vrcp.f32 %v744_v49 }
 0x30b   : > { %v3010_v52 = vpop.eup %3009 }
 0x30c   : > { %v746_v54 = vmul.f32 %v3010_v52, %v3008_v37  ;;  %v2932_v37 = vpack.c.bf16 %v2557_v36, %v2556_v35 }
 0x30e   : > { %2735 = vmatmul.mubr.msk.f32.vlgmr.msra.gmra.mrb[4].mxu1 %vm659_vm2, %v746_v54  ;;  %747 = vst.msk [vmem:[%s3366_s22] sm:$0xff] %vm659_vm2, %v746_v54 }
 0x30f   : > { %2912 = vmatpush3.bf16.msra.mxu1 %v2911_v53  ;;  %2756 = vmatprep.mubr.msk.f32.mxu1 %vm3120_vm0, %v3121_v11 }
 0x310   : > { %2913 = vmatprep.subr.bf16.mxu1 %v3119_v3 }
 0x313   : > { %2915 = vmatpush3.bf16.msra.mxu1 %v2914_v57 }
 0x314   : > { %2770 = vmatprep.subr.mxu1 %v3121_v11 }
 0x316   : > { %2757 = vmatmul.mubr.msk.f32.vlgmr.msra.gmra.mrb[6].mxu1 %vm423_vm1, %v3276_v14 }
 0x317   : > { %2772 = vmatprep.mubr.msk.f32.mxu1 %vm3120_vm0, %v3121_v11 }
 0x3e1   : > { %v817_v60 = vpop.f32.mrb[4].mxu1 }
 0x3e2   : > { %v2736_v61 = vpop.f32.mrb[5].mxu1 }
 0x3e3   : > { %v2563_v61 = vld [vmem:[%s3709_s3 + $0x50] sm:$0xff] }
 0x3e9   : > { %v984_v0 = vpop.f32.mrb[6].mxu1 }
 0x3ea   : > { %v985_v1 = vadd.f32 %v2531_v62, %v984_v0  ;;  %v2758_v2 = vpop.f32.mrb[7].mxu1  ;;  %v2938_v0 = vpack.c.bf16 %v2564_v63, %v2563_v61 }
 0x3ec   : > { %2771 = vmatpush3.xpose.msk.msra.mxu1 %vm659_vm2, %v985_v1 }
 0x3ed   : > { %2775 = vmatprep.subr.mxu1 %v3121_v11 }
 0x3ef   : > { %2773 = vmatmul.mubr.msk.f32.vlgmr.msra.gmra.mrb[8].mxu1 %vm659_vm2, %v902_v4 }
 0x3f0   : > { %2777 = vmatprep.mubr.msk.f32.mxu1 %vm3120_vm0, %v3121_v11  ;;  %2776 = vmatpush3.msra.mxu1 %v1068_v25  ;;  %v2577_v25 = vld [vmem:[%s3706_s1 + $0x78] sm:$0xff] }
 0x3f1   : > { %2785 = vmatprep.subr.mxu1 %v3121_v11  ;;  %v2944_v26 = vpack.c.bf16 %v2577_v25, %v2576_v24 }
 0x4c2   : > { %v1143_v12 = vpop.f32.mrb[8].mxu1 }
 0x4c3   : > { %v1144_v13 = vadd.f32 %v1143_v12, %v3322_v29  ;;  %v2774_v15 = vpop.f32.mrb[9].mxu1 }
 0x4c5   : > { %v1147_v16 = vsel %vm659_vm2, %v1144_v13, -inf }
 0x4c6   : > { %1148 = vmax.xlane.f32.xlu1 %v1147_v16 }
 0x553   : > { %v1149_v17 = vpop.xlane.xlu1 %1148 }
 0x554   : > { %v1150_v18 = vsub.f32 %v1144_v13, %v1149_v17  ;;  %v2566_v13 = vld [vmem:[%s3692_s6 + $0x2] ss:$0 sm:$0xff]  ;;  %v2572_v17 = vld [vmem:[%s3693_s7 + $0x10] sm:$0xff] }
 0x556   : > { %v1151_v19 = vmul.f32 1.442695, %v1150_v18 }
 0x558   : > { %3011 = vpow2.f32 %v1151_v19 }
 0x562   : > { %v3012_v20 = vpop.eup %3011 }
 0x563   : > { %v1153_v21 = vsel %vm659_vm2, %v3012_v20, 0.0 }
 0x564   : > { %1154 = vadd.xlane.f32.xlu1 %v1153_v21  ;;  %v2574_v21 = vld [vmem:[%s3706_s1 + $0x60] sm:$0xff] }
 0x565   : > { %v2941_v23 = vpack.c.bf16 %v2575_v22, %v2574_v21 }
 0x5f1   : > { %v1155_v27 = vpop.xlane.xlu1 %1154 }
 0x5f2   : > { %3013 = vrcp.f32 %v1155_v27  ;;  %v2581_v27 = vld [vmem:[%s3705_s2 + $0x60] sm:$0xff] }
 0x5fc   : > { %v3014_v28 = vpop.eup %3013 }
 0x5fd   : > { %v1157_v30 = vmul.f32 %v3014_v28, %v3012_v20  ;;  %v2582_v28 = vld [vmem:[%s3705_s2 + $0x68] sm:$0xff] }
 0x5ff   : > { %2778 = vmatmul.mubr.msk.f32.vlgmr.msra.gmra.mrb[10].mxu1 %vm659_vm2, %v1157_v30  ;;  %2542 = vst.msk [vmem:[%s3366_s22 + $0x8] sm:$0xff] %vm659_vm2, %v1157_v30  ;;  %v2947_v30 = vpack.c.bf16 %v2582_v28, %v2581_v27 }
 0x600   : > { %2786 = vmatpush3.msra.mxu1 %v821_v31  ;;  %2787 = vmatprep.mubr.msk.f32.mxu1 %vm3120_vm0, %v3121_v11  ;;  %v2583_v31 = vld [vmem:[%s3705_s2 + $0x70] sm:$0xff] }
 0x601   : > { %2928 = vmatprep.subr.bf16.mxu1 %v3119_v3  ;;  %v2950_v35 = vpack.c.bf16 %v2584_v32, %v2583_v31 }
 0x603   : > { %2788 = vmatmul.mubr.msk.f32.vlgmr.msra.gmra.mrb[12].mxu1 %vm659_vm2, %v817_v60  ;;  %v2562_v60 = vld [vmem:[%s3709_s3 + $0x48] sm:$0xff] }
 0x604   : > { %2930 = vmatpush3.bf16.msra.mxu1 %v2929_v34  ;;  %2809 = vmatprep.mubr.msk.f32.mxu1 %vm3120_vm0, %v3121_v11  ;;  %v2935_v62 = vpack.c.bf16 %v2562_v60, %v2561_v59 }
 0x605   : > { %2931 = vmatprep.subr.bf16.mxu1 %v3119_v3 }
 0x608   : > { %2933 = vmatpush3.bf16.msra.mxu1 %v2932_v37 }
 0x609   : > { %2823 = vmatprep.subr.mxu1 %v3121_v11 }
 0x60b   : > { %2810 = vmatmul.mubr.msk.f32.vlgmr.msra.gmra.mrb[14].mxu1 %vm423_vm1, %v3276_v14 }
 0x60c   : > { %2825 = vmatprep.mubr.msk.f32.mxu1 %vm3120_vm0, %v3121_v11 }
 0x6d2   : > { %v1229_v43 = vpop.f32.mrb[10].mxu1 }
 0x6d3   : > { %v2779_v44 = vpop.f32.mrb[11].mxu1  ;;  %2783 = vmatmul.mubr.msk.f32.vlgmr.msra.gmra.mrb[8].mxu0 %vm659_vm2, %v1229_v43 }
 0x6d4   : > { %2924 = vmatpush3.bf16.msra.mxu0 %v2923_v40  ;;  %2798 = vmatprep.mubr.msk.f32.mxu0 %vm3120_vm0, %v3121_v11 }
 0x6d5   : > { %2925 = vmatprep.subr.bf16.mxu0 %v3119_v3 }
 0x6d6   : > { %v1377_v46 = vpop.f32.mrb[12].mxu1 }
 0x6d7   : > { %v2789_v47 = vpop.f32.mrb[13].mxu1 }
 0x6d8   : > { %2927 = vmatpush3.bf16.msra.mxu0 %v2926_v45  ;;  %v2588_v47 = vld [vmem:[%s3709_s3 + $0x60] sm:$0xff] }
 0x6d9   : > { %2934 = vmatprep.subr.bf16.mxu0 %v3119_v3 }
 0x6db   : > { %2799 = vmatmul.mubr.msk.f32.vlgmr.msra.gmra.mrb[10].mxu0 %vm423_vm1, %v3276_v14 }
 0x6dc   : > { %2820 = vmatprep.mubr.msk.f32.mxu0 %vm3120_vm0, %v3121_v11  ;;  %2936 = vmatpush3.bf16.msra.mxu0 %v2935_v62  ;;  %v2599_v62 = vld [vmem:[%s3693_s7 + $0x18] sm:$0xff] }
 0x6dd   : > { %2937 = vmatprep.subr.bf16.mxu0 %v3119_v3 }
 0x6de   : > { %v1543_v49 = vpop.f32.mrb[14].mxu1 }
 0x6df   : > { %v1544_v50 = vadd.f32 %v2559_v48, %v1543_v49  ;;  %v2811_v51 = vpop.f32.mrb[15].mxu1  ;;  %v2589_v48 = vld [vmem:[%s3709_s3 + $0x68] sm:$0xff]  ;;  %v2590_v49 = vld [vmem:[%s3709_s3 + $0x70] sm:$0xff] }
 0x6e0   : > { %2939 = vmatpush3.bf16.msra.mxu0 %v2938_v0  ;;  %v2591_v51 = vld [vmem:[%s3709_s3 + $0x78] sm:$0xff] }
 0x6e1   : > { %2824 = vmatpush3.xpose.msk.msra.mxu1 %vm659_vm2, %v1544_v50  ;;  %2833 = vmatprep.subr.mxu0 %v3121_v11  ;;  %v2953_v50 = vpack.c.bf16 %v2589_v48, %v2588_v47 }
 0x6e2   : > { %2828 = vmatprep.subr.mxu1 %v3121_v11 }
 0x6e3   : > { %2821 = vmatmul.mubr.msk.f32.vlgmr.msra.gmra.mrb[12].mxu0 %vm423_vm1, %v3276_v14 }
 0x6e4   : > { %2835 = vmatprep.mubr.msk.f32.mxu0 %vm3120_vm0, %v3121_v11  ;;  %2834 = vmatpush3.msra.mxu0 %v2572_v17 }
 0x6e5   : > { %2946 = vmatprep.subr.bf16.mxu0 %v3119_v3 }
 0x7a6   : > { %v1304_v52 = vpop.f32.mrb[8].mxu0 }
 0x7a7   : > { %v3474_v53 = vadd.f32 %v1377_v46, %v1304_v52  ;;  %v2784_v54 = vpop.f32.mrb[9].mxu0  ;;  %v2956_v52 = vpack.c.bf16 %v2591_v51, %v2590_v49 }
 0x7ae   : > { %v1460_v56 = vpop.f32.mrb[10].mxu0 }
 0x7af   : > { %v1461_v57 = vadd.f32 %v2552_v55, %v1460_v56  ;;  %v2800_v58 = vpop.f32.mrb[11].mxu0 }
 0x7b1   : > { %2826 = vmatmul.mubr.msk.f32.vlgmr.msra.gmra.mrb[16].mxu1 %vm659_vm2, %v1461_v57 }
 0x7b2   : > { %2830 = vmatprep.mubr.msk.f32.mxu1 %vm3120_vm0, %v3121_v11 }
 0x7b6   : > { %v1626_v12 = vpop.f32.mrb[12].mxu0 }
 0x7b7   : > { %v2822_v15 = vpop.f32.mrb[13].mxu0  ;;  %v1627_v16 = vadd.f32 %v2566_v13, %v1626_v12 }
 0x7b9   : > { %2829 = vmatpush3.msra.mxu1 %v1627_v16 }
 0x7ba   : > { %2940 = vmatprep.subr.bf16.mxu1 %v3119_v3 }
 0x884   : > { %v1702_v1 = vpop.f32.mrb[16].mxu1 }
 0x885   : > { %v1703_v2 = vadd.f32 %v1702_v1, %v3322_v29  ;;  %v2827_v4 = vpop.f32.mrb[17].mxu1 }
 0x887   : > { %v1706_v5 = vsel %vm659_vm2, %v1703_v2, -inf }
 0x888   : > { %1707 = vmax.xlane.f32.xlu0 %v1706_v5 }
 0x915   : > { %v1708_v6 = vpop.xlane.xlu0 %1707 }
 0x916   : > { %v1709_v7 = vsub.f32 %v1703_v2, %v1708_v6 }
 0x918   : > { %v1710_v8 = vmul.f32 1.442695, %v1709_v7 }
 0x91a   : > { %3015 = vpow2.f32 %v1710_v8 }
 0x924   : > { %v3016_v9 = vpop.eup %3015 }
 0x925   : > { %v1712_v10 = vsel %vm659_vm2, %v3016_v9, 0.0 }
 0x926   : > { %1713 = vadd.xlane.f32.xlu1 %v1712_v10 }
 0x9b3   : > { %v1714_v18 = vpop.xlane.xlu1 %1713 }
 0x9b4   : > { %3017 = vrcp.f32 %v1714_v18 }
 0x9be   : > { %v3018_v19 = vpop.eup %3017 }
 0x9bf   : > { %v1716_v20 = vmul.f32 %v3018_v19, %v3016_v9 }
 0x9c1   : > { %2831 = vmatmul.mubr.msk.f32.vlgmr.msra.gmra.mrb[18].mxu1 %vm659_vm2, %v1716_v20  ;;  %2570 = vst.msk [vmem:[%s3366_s22 + $0x10] sm:$0xff] %vm659_vm2, %v1716_v20 }
 0x9c2   : > { %2846 = vmatprep.mubr.msk.f32.mxu1 %vm3120_vm0, %v3121_v11  ;;  %2942 = vmatpush3.bf16.msra.mxu1 %v2941_v23 }
 0x9c3   : > { %2943 = vmatprep.subr.bf16.mxu1 %v3119_v3 }
 0x9c6   : > { %2945 = vmatpush3.bf16.msra.mxu1 %v2944_v26 }
 0x9c7   : > { %2952 = vmatprep.subr.bf16.mxu1 %v3119_v3 }
 0x9c9   : > { %2847 = vmatmul.mubr.msk.f32.vlgmr.msra.gmra.mrb[20].mxu1 %vm423_vm1, %v3276_v14 }
 0x9ca   : > { %2868 = vmatprep.mubr.msk.f32.mxu1 %vm3120_vm0, %v3121_v11  ;;  %2954 = vmatpush3.bf16.msra.mxu1 %v2953_v50 }
 0x9cb   : > { %2955 = vmatprep.subr.bf16.mxu1 %v3119_v3 }
 0x9ce   : > { %2957 = vmatpush3.bf16.msra.mxu1 %v2956_v52 }
 0x9cf   : > { %2881 = vmatprep.subr.mxu1 %v3121_v11 }
 0x9d1   : > { %2869 = vmatmul.mubr.msk.f32.vlgmr.msra.gmra.mrb[22].mxu1 %vm423_vm1, %v3276_v14 }
 0x9d2   : > { %2883 = vmatprep.mubr.msk.f32.mxu1 %vm3120_vm0, %v3121_v11  ;;  %2882 = vmatpush3.msra.mxu1 %v2599_v62 }
 0xa94   : > { %v1788_v33 = vpop.f32.mrb[18].mxu1 }
 0xa95   : > { %v2832_v34 = vpop.f32.mrb[19].mxu1  ;;  %2836 = vmatmul.mubr.msk.f32.vlgmr.msra.gmra.mrb[14].mxu0 %vm659_vm2, %v1788_v33 }
 0xa96   : > { %2948 = vmatpush3.bf16.msra.mxu0 %v2947_v30  ;;  %2857 = vmatprep.mubr.msk.f32.mxu0 %vm3120_vm0, %v3121_v11 }
 0xa97   : > { %2949 = vmatprep.subr.bf16.mxu0 %v3119_v3 }
 0xa9a   : > { %2951 = vmatpush3.bf16.msra.mxu0 %v2950_v35 }
 0xa9b   : > { %2871 = vmatprep.subr.mxu0 %v3121_v11 }
 0xa9c   : > { %v1947_v36 = vpop.f32.mrb[20].mxu1 }
 0xa9d   : > { %2858 = vmatmul.mubr.msk.f32.vlgmr.msra.gmra.mrb[16].mxu0 %vm423_vm1, %v3276_v14  ;;  %v2848_v37 = vpop.f32.mrb[21].mxu1  ;;  %v1948_v46 = vadd.f32 %v2579_v42, %v1947_v36 }
 0xa9e   : > { %2873 = vmatprep.mubr.msk.f32.mxu0 %vm3120_vm0, %v3121_v11 }
 0xaa4   : > { %v2113_v14 = vpop.f32.mrb[22].mxu1 }
 0xb68   : > { %v1863_v38 = vpop.f32.mrb[14].mxu0 }
 0xb69   : > { %v3556_v39 = vadd.f32 %v1863_v38, %v3474_v53  ;;  %v2837_v40 = vpop.f32.mrb[15].mxu0 }
 0xb70   : > { %v2030_v43 = vpop.f32.mrb[16].mxu0 }
 0xb71   : > { %v2031_v44 = vadd.f32 %v2586_v41, %v2030_v43  ;;  %v2859_v45 = vpop.f32.mrb[17].mxu0 }
 0xb73   : > { %2872 = vmatpush3.xpose.msk.msra.mxu0 %vm659_vm2, %v2031_v44 }
 0xb74   : > { %2876 = vmatprep.subr.mxu0 %v3121_v11 }
 0xb76   : > { %2874 = vmatmul.mubr.msk.f32.vlgmr.msra.gmra.mrb[18].mxu0 %vm659_vm2, %v1948_v46 }
 0xb77   : > { %2878 = vmatprep.mubr.msk.f32.mxu0 %vm3120_vm0, %v3121_v11  ;;  %v2593_v11 = vld [vmem:[%s3692_s6 + $0x3] ss:$0 sm:$0xff] }
 0xb78   : > { %v2114_v61 = vadd.f32 %v2593_v11, %v2113_v14 }
 0xb7a   : > { %2877 = vmatpush3.msra.mxu0 %v2114_v61 }
 0xc49   : > { %v2189_v53 = vpop.f32.mrb[18].mxu0 }
 0xc4a   : > { %v2190_v54 = vadd.f32 %v2189_v53, %v3322_v29  ;;  %v2875_v55 = vpop.f32.mrb[19].mxu0  ;;  %v2870_v29 = vpop.f32.mrb[23].mxu1 }
 0xc4c   : > { %v2193_v56 = vsel %vm659_vm2, %v2190_v54, -inf }
 0xc4d   : > { %2194 = vmax.xlane.f32.xlu0 %v2193_v56 }
 0xcda   : > { %v2195_v57 = vpop.xlane.xlu0 %2194 }
 0xcdb   : > { %v2196_v58 = vsub.f32 %v2190_v54, %v2195_v57 }
 0xcdd   : > { %v2197_v59 = vmul.f32 1.442695, %v2196_v58 }
 0xcdf   : > { %3019 = vpow2.f32 %v2197_v59 }
 0xce9   : > { %v3020_v3 = vpop.eup %3019 }
 0xcea   : > { %v2199_v60 = vsel %vm659_vm2, %v3020_v3, 0.0 }
 0xceb   : > { %2200 = vadd.xlane.f32.xlu1 %v2199_v60 }
 0xd78   : > { %v2201_v63 = vpop.xlane.xlu1 %2200 }
 0xd79   : > { %3021 = vrcp.f32 %v2201_v63 }
 0xd83   : > { %v3022_v0 = vpop.eup %3021 }
 0xd84   : > { %v2203_v1 = vmul.f32 %v3022_v0, %v3020_v3 }
 0xd86   : > { %2879 = vmatmul.mubr.msk.f32.vlgmr.msra.gmra.mrb[20].mxu0 %vm659_vm2, %v2203_v1  ;;  %2597 = vst.msk [vmem:[%s3366_s22 + $0x18] sm:$0xff] %vm659_vm2, %v2203_v1  ;;  %s3029_s22 = scalar_lea.vmem %s3028_s0, 1024 }
 0xd87   : > { %p3031_p1 = scmp.lt.s32.totalorder %s3029_s22, %s3023_s29 }
 0xd89   : > { %p3032_p2 = por %p3031_p1, %p3030_p0 }
 0xd8b   : > { %p3033_p3 = pnand %p3032_p2, %p3026_p13 }
 0xe59   : > { %v2275_v2 = vpop.f32.mrb[20].mxu0 }
 0xe5a   : > { %v2880_v4 = vpop.f32.mrb[21].mxu0  ;;  %2884 = vmatmul.mubr.msk.f32.vlgmr.msra.gmra.mrb[24].mxu1 %vm659_vm2, %v2275_v2 }
 0xe5b   : > { %3036 = shalt.err (!%p3033_p3)
}
 0xe5c   : > { %s3037_s13 = scalar_lea.hbm %s3607_s24, 512  ;;  %s3041_s30 = scalar_lea.hbm %s3697_s11, 1024 }
 0xe5d   : > { %p3038_p4 = scmp.ne.s32.totalorder %s3607_s24, %s3037_s13  ;;  %p3042_p9 = scmp.lt.u32.totalorder %s3607_s24, %s3697_s11 }
 0xe5e   : > { %p3043_p10 = scmp.lt.u32.totalorder %s3041_s30, %s3037_s13  ;;  %p3045_p12 = scmp.lt.u32.totalorder %s3037_s13, %s3607_s24 }
 0xe5f   : > { %p3039_p7 = pnand %p3038_p4, %p3224_p5 }
 0xe60   : > { %p3044_p11 = por %p3043_p10, %p3042_p9 }
 0xe61   : > { %p3040_p8 = pneg %p3039_p7 }
 0xe62   : > { %p3046_p13 = por %p3045_p12, %p3044_p11 }
 0xe64   : > { %p3047_p0 = pnand %p3046_p13, %p3040_p8 }
 0xe66   : > { %3050 = shalt.err (!%p3047_p0)
}
 0xe67   : > { %s3123_s29 = smov 128   ;;  %s3124_s22 = smov 8   ;;  %v2601_v6 = vld [vmem:[%s3694_s8] ss:$0 sm:$0xff] }
 0xe68   : > { %s3710_s14 = scalar_lea.sflag [#allocation5], %s3350_s16  ;;  %s2506_s25 = sshll.u32 %s3350_s16, 3 }
 0xe69   : > { %2959 = dma.vmem_to_hbm [thread:$0]  (%p3224_p5), %s3602_s12, 512, %s3607_s24, %s3710_s14, %s3123_s29, %s3123_s29, %s3124_s22  }
 0xe6a   : > { %s2604_s30 = sshll.u32 %s3207_s21, 7  ;;  %s394_s0 = scalar_lea.vmem [#allocation2], %s2506_s25 }
 0xe6b   : > { %s2383_s1 = sshll.u32 %s394_s0, 4  ;;  %s3642_s4 = scalar_lea.hbm %s3696_s10, %s2604_s30  ;;  %s3644_s1 = int_to_ptr.vmem [resolvable:$true] %s2383_s1 }
 0xe6c   : > { %s2365_s12 = scalar_lea.sflag [#allocation3], %s3350_s16  ;;  %s3051_s21 = scalar_lea.vmem %s3644_s1, 128 }
 0xe6d   : > { %p3052_p1 = scmp.ne.s32.totalorder %s3644_s1, %s3051_s21  ;;  %s3125_s24 = smov [#allocation2]  }
 0xe6e   : > { %s3055_s29 = sshll.u32 %s3125_s24, 4  ;;  %s3056_s29 = int_to_ptr.vmem [resolvable:$false] %s3055_s29 }
 0xe6f   : > { %p3053_p2 = pnand %p3052_p1, %p3224_p5  ;;  %s3057_s22 = scalar_lea.vmem %s3056_s29, 256 }
 0xe70   : > { %p3058_p4 = scmp.lt.s32.totalorder %s3644_s1, %s3056_s29  ;;  %p3059_p7 = scmp.lt.s32.totalorder %s3057_s22, %s3051_s21 }
 0xe71   : > { %p3054_p3 = pneg %p3053_p2 }
 0xe72   : > { %p3060_p8 = por %p3059_p7, %p3058_p4 }
 0xe74   : > { %p3061_p9 = pnand %p3060_p8, %p3054_p3 }
 0xf2d   : > { %v2350_v5 = vpop.f32.mrb[24].mxu1 }
 0xf2e   : > { %v2354_v7 = vadd.f32 %v2350_v5, %v3556_v39  ;;  %v2885_v8 = vpop.f32.mrb[25].mxu1 }
 0xf30   : > { %v2362_v9 = vadd.f32 %v2601_v6, %v2354_v7 }
 0xf32   : > { %2363 = vst.msk [vmem:[%s394_s0] sm:$0xff] %vm423_vm1, %v2362_v9 }
 0xf33   : > { %3064 = shalt.err (!%p3061_p9)
}
 0xf34   : > { %s3065_s2 = scalar_lea.hbm %s3642_s4, 128  ;;  %s3069_s14 = scalar_lea.hbm %s3696_s10, 256 }
 0xf35   : > { %p3066_p10 = scmp.ne.s32.totalorder %s3642_s4, %s3065_s2  ;;  %p3070_p13 = scmp.lt.u32.totalorder %s3642_s4, %s3696_s10 }
 0xf36   : > { %p3071_p0 = scmp.lt.u32.totalorder %s3069_s14, %s3065_s2  ;;  %p3073_p2 = scmp.lt.u32.totalorder %s3065_s2, %s3642_s4 }
 0xf37   : > { %p3067_p11 = pnand %p3066_p10, %p3224_p5 }
 0xf38   : > { %p3072_p1 = por %p3071_p0, %p3070_p13 }
 0xf39   : > { %p3068_p12 = pneg %p3067_p11 }
 0xf3a   : > { %p3074_p3 = por %p3073_p2, %p3072_p1 }
 0xf3c   : > { %p3075_p4 = pnand %p3074_p3, %p3068_p12 }
 0xf3e   : > { %3078 = shalt.err (!%p3075_p4)
}
 0xf3f   : > { %2958 = dma.vmem_to_hbm [thread:$0]  (%p3224_p5), %s3644_s1, 128, %s3642_s4, %s2365_s12  }
 0xf40 PF: > { %p2969_p7 = scmp.ge.s32.totalorder %s3117_s20, 2  ;;  %s2411_s13 = sand.u32 1, %s3105_s17  }
 0xf41   : > { %s2412_s30 = scalar_lea.sflag [#allocation3], %s2411_s13 }
 0xf42   : > { %p2963_p8 = pnand %p2969_p7, %p3228_p6 }
 0xf44   : > { %3096 = dma.done.wait (!%p2963_p8), %s2412_s30, 128  }
 0xf45   : > { %3098 = vsyncadd (!%p2963_p8), %s2412_s30, 4294967168  ;;  %s2421_s0 = scalar_lea.sflag [#allocation5], %s2411_s13 }
 0xf46   : > { %3100 = dma.done.wait (!%p2963_p8), %s2421_s0, 512  }
 0xf47   : > { %3102 = vsyncadd (!%p2963_p8), %s2421_s0, 4294966784  ;;  %p25_p5 = scmp.ge.s32.totalorder %s3211_s23, 4   ;;  %s3711_s17 = smov %s3109_s18 }
 0xf48   : > { %s3712_s18 = smov %s3113_s19  ;;  %s3713_s19 = smov %s3222_s26 }
 0xf49   : > { %s3714_s20 = smov %s3211_s23  ;;  %27 = sbr.rel (!%p25_p5) target bundleno = 11 (0xb), region = 139 }
 0xf50   :  { %2426 = vsyncpa [#allocation3], 1 }
 0xf51   :  { %2428 = vsyncpa [#allocation3 + $0x1], 1 }
 0xf52   :  { %2429 = vsyncpa [#allocation5], 1 }
 0xf53   :  { %2431 = vsyncpa [#allocation5 + $0x1], 1 }

</bundles_post_ra>
